<compile_context>
chip_gen: v7x
topology: tpu7x:2x2x1
jax: 0.10.0
libtpu: 0.0.40
codegen_flags: <defaults>
</compile_context>

<pallas_src>
import math
import functools
import numpy as np

import jax
import jax.numpy as jnp
from jax.experimental import pallas as pl
from jax.experimental.pallas import tpu as pltpu


def _round_up(x, m):
    return ((x + m - 1) // m) * m


def _silu(h):
    # sigmoid(x) == 0.5 * (1 + tanh(x/2))  ->  one EUP transcendental per elem
    return 0.5 * h * (jnp.tanh(0.5 * h) + 1.0)


# ---------------------------------------------------------------------------
# Time-branch kernel: KAN([din, d_model, 1]) surrogate, din tiny, dout == 1.
# x_ref: (din, tile_c)  (rows of the flattened input on the lane axis)
# o_ref: (1, tile_c)    (lane-dense output block)
# ---------------------------------------------------------------------------
def _kan_time_kernel(x_ref, w1t_ref, b1_ref, w2_ref, b2_ref, o_ref):
    x = x_ref[...].astype(jnp.float32)            # (din, tile_c)
    w1t = w1t_ref[...]                            # (d_model, din)
    din = x.shape[0]
    # Layer 1 as a rank-din outer-product FMA chain on the VPU (EUP binds
    # this kernel, so the VPU work is hidden filler).  h: (d_model, tile_c)
    h = w1t[:, 0:1] * x[0:1, :] + b1_ref[...]
    for j in range(1, din):
        h = h + w1t[:, j:j + 1] * x[j:j + 1, :]
    a = _silu(h)                                  # f32, single tanh
    # Layer 2 (dout == 1): weighted reduction over the d_model (sublane) axis.
    y = jnp.sum(a * w2_ref[...], axis=0, keepdims=True) + b2_ref[...]
    o_ref[...] = y.astype(o_ref.dtype)            # (1, tile_c), unmasked store


def kan_time_apply(x, params, *, tile_cols=2048):
    """Apply the KAN([din, d_model, 1]) surrogate along the last axis of x."""
    w1, b1, w2, b2 = params                       # (din,dm),(1,dm),(dm,1),(1,1)
    lead = x.shape[:-1]
    din = x.shape[-1]
    dm = w1.shape[1]
    n = int(np.prod(lead))

    # rows -> lane axis: (n, din) -> (din, n_pad); only a tiny pad is added.
    xt = jnp.transpose(x.reshape(n, din))         # (din, n)
    n_pad = _round_up(n, 128)
    if n_pad != n:
        xt = jnp.pad(xt, ((0, 0), (0, n_pad - n)))
    if n_pad <= tile_cols:
        tile_c = n_pad
    else:
        tile_c = max(128, (tile_cols // 128) * 128)

    w1t = jnp.transpose(w1)                       # (dm, din)
    b1c = b1.reshape(dm, 1)                       # bias as a column

    out = pl.pallas_call(
        _kan_time_kernel,
        out_shape=jax.ShapeDtypeStruct((1, n_pad), jnp.float32),
        grid=(pl.cdiv(n_pad, tile_c),),
        in_specs=[
            pl.BlockSpec((din, tile_c), lambda i: (0, i)),
            pl.BlockSpec((dm, din), lambda i: (0, 0)),    # resident weights
            pl.BlockSpec((dm, 1), lambda i: (0, 0)),
            pl.BlockSpec((dm, 1), lambda i: (0, 0)),
            pl.BlockSpec((1, 1), lambda i: (0, 0)),
        ],
        out_specs=pl.BlockSpec((1, tile_c), lambda i: (0, i)),
        compiler_params=pltpu.CompilerParams(
            dimension_semantics=("parallel",),
            vmem_limit_bytes=32 * 1024 * 1024),
    )(xt, w1t, b1c, w2, b2)
    return out.reshape(n_pad)[:n].reshape(lead)


# ---------------------------------------------------------------------------
# Space-branch fused kernel: local KAN([C,dm,C]) on x_in + global KAN([C,dm,C])
# reduced (mean) over the K axis of in_x, in one pallas_call.  The mean
# commutes with the second linear layer, so only layer-1 activations are
# accumulated over k (f32 VMEM scratch) and the second matmul runs once.
# ---------------------------------------------------------------------------
def _kan_space_kernel(xin_ref, gx_ref,
                      lw1_ref, lb1_ref, lw2_ref, lb2_ref,
                      gw1_ref, gb1_ref, gw2_ref, gb2_ref,
                      lout_ref, gout_ref, acc_ref, *, inv_k):
    k = pl.program_id(1)

    @pl.when(k == 0)
    def _():
        # local-space KAN on the resident x_in tile; init the activation acc.
        h = jnp.dot(xin_ref[...], lw1_ref[...],
                    preferred_element_type=jnp.float32) + lb1_ref[...]
        a = _silu(h)
        lout_ref[...] = (jnp.dot(a.astype(jnp.bfloat16), lw2_ref[...],
                                 preferred_element_type=jnp.float32)
                         + lb2_ref[...]).astype(lout_ref.dtype)
        acc_ref[...] = jnp.zeros_like(acc_ref)

    # global-space KAN layer 1 + SiLU on the k-th slice; accumulate in f32.
    hg = jnp.dot(gx_ref[0], gw1_ref[...],
                 preferred_element_type=jnp.float32) + gb1_ref[...]
    acc_ref[...] = acc_ref[...] + _silu(hg)

    @pl.when(k == pl.num_programs(1) - 1)
    def _():
        a_mean = (acc_ref[...] * inv_k).astype(jnp.bfloat16)
        gout_ref[...] = (jnp.dot(a_mean, gw2_ref[...],
                                 preferred_element_type=jnp.float32)
                         + gb2_ref[...]).astype(gout_ref.dtype)


def kan_space_fused(x_in, in_x, local_params, global_params, *, tile_bl=2048):
    """Returns (local_space, global_space) outputs, each shaped (B*L, M)."""
    B, L, M = x_in.shape
    K = in_x.shape[-1]
    n_bl = B * L
    xf = x_in.reshape(n_bl, M).astype(jnp.bfloat16)
    # (B,L,M,K) -> (K, B*L, M), bf16 fused into the transpose: the dominant
    # HBM stream is moved once in bf16 instead of twice in f32.
    gx = jnp.transpose(in_x.astype(jnp.bfloat16).reshape(n_bl, M, K), (2, 0, 1))

    lw1, lb1, lw2, lb2 = local_params
    gw1, gb1, gw2, gb2 = global_params
    dm = lw1.shape[1]
    # pre-cast matmul weights once (biases stay f32 for f32 accumulation)
    lw1b, lw2b = lw1.astype(jnp.bfloat16), lw2.astype(jnp.bfloat16)
    gw1b, gw2b = gw1.astype(jnp.bfloat16), gw2.astype(jnp.bfloat16)

    # row tile: big enough to amortize per-step overhead, capped so the
    # parallel axis has >= 2 tiles (keeps both v7x TensorCores busy).
    if n_bl >= 16:
        tile = min(max(8, (tile_bl // 8) * 8), _round_up(pl.cdiv(n_bl, 2), 8))
    else:
        tile = n_bl
    tile = min(tile, n_bl)
    num_tiles = pl.cdiv(n_bl, tile)

    kern = functools.partial(_kan_space_kernel, inv_k=1.0 / K)
    wspec = lambda shape: pl.BlockSpec(shape, lambda i, k: (0, 0))

    local_out, global_out = pl.pallas_call(
        kern,
        out_shape=(jax.ShapeDtypeStruct((n_bl, M), jnp.float32),
                   jax.ShapeDtypeStruct((n_bl, M), jnp.float32)),
        grid=(num_tiles, K),
        in_specs=[
            pl.BlockSpec((tile, M), lambda i, k: (i, 0)),        # x_in (resident over k)
            pl.BlockSpec((1, tile, M), lambda i, k: (k, i, 0)),  # k-th slice of in_x
            wspec((M, dm)), wspec((1, dm)), wspec((dm, M)), wspec((1, M)),
            wspec((M, dm)), wspec((1, dm)), wspec((dm, M)), wspec((1, M)),
        ],
        out_specs=(pl.BlockSpec((tile, M), lambda i, k: (i, 0)),
                   pl.BlockSpec((tile, M), lambda i, k: (i, 0))),
        scratch_shapes=[pltpu.VMEM((tile, dm), jnp.float32)],    # activation acc
        compiler_params=pltpu.CompilerParams(
            dimension_semantics=("parallel", "arbitrary"),
            vmem_limit_bytes=48 * 1024 * 1024),
    )(xf, gx, lw1b, lb1, lw2b, lb2, gw1b, gb1, gw2b, gb2)
    return local_out, global_out


# ---------------------------------------------------------------------------
# Parameters and model wrapper
# ---------------------------------------------------------------------------
def init_kan(key, dims):
    """Deterministic params for the KAN([din, d_model, dout]) surrogate."""
    din, d_model, dout = dims
    assert din >= 1, (
        "KAN input width must be >= 1 (got %d); require global_size[i] > "
        "local_size[i] and local_size[i] > 1." % din)
    k1, k2, k3, k4 = jax.random.split(key, 4)
    s1 = 1.0 / math.sqrt(din)
    s2 = 1.0 / math.sqrt(d_model)
    w1 = jax.random.uniform(k1, (din, d_model), jnp.float32, -s1, s1)
    b1 = jax.random.uniform(k2, (1, d_model), jnp.float32, -s1, s1)
    w2 = jax.random.uniform(k3, (d_model, dout), jnp.float32, -s2, s2)
    b2 = jax.random.uniform(k4, (1, dout), jnp.float32, -s2, s2)
    return (w1, b1, w2, b2)


def _flatten(lst):
    for item in lst:
        if isinstance(item, (list, tuple)):
            yield from _flatten(item)
        else:
            yield item


class GRUSTAD:
    def __init__(self, batch_size, win_size, enc_in, c_out, d_model=256,
                 local_size=(3,), global_size=(1,), channel=55,
                 dropout=0.05, mul_num=3, output_attention=True, key=None):
        self.output_attention = output_attention
        self.local_size = list(local_size)
        self.global_size = list(global_size)
        self.channel = channel
        self.win_size = win_size
        self.d_model = d_model
        self.batch_size = batch_size
        self.mul_num = mul_num

        if key is None:
            key = jax.random.PRNGKey(0)
        keys = jax.random.split(key, 4 * len(self.local_size))
        self.kan_local_time = [
            init_kan(keys[4 * i + 0], [ls - 1, d_model, 1])
            for i, ls in enumerate(self.local_size)
        ]
        self.kan_global_time = [
            init_kan(keys[4 * i + 1], [self.global_size[i] - ls, d_model, 1])
            for i, ls in enumerate(self.local_size)
        ]
        self.kan_local_space = [
            init_kan(keys[4 * i + 2], [channel, d_model, channel])
            for i, ls in enumerate(self.local_size)
        ]
        self.kan_global_space = [
            init_kan(keys[4 * i + 3], [channel, d_model, channel])
            for i, ls in enumerate(self.local_size)
        ]

    def forward(self, x_in, in_size, in_num, op, it, in_x):
        B, L, M = x_in.shape
        local_out_time, global_out_time = [], []
        local_out_space, global_out_space = [], []

        for index, localsize in enumerate(self.local_size):
            local_out_time.append(
                kan_time_apply(in_size[index],
                               self.kan_local_time[index]).reshape(B, L, M))
            global_out_time.append(
                kan_time_apply(in_num[index],
                               self.kan_global_time[index]).reshape(B, L, M))
            l_sp, g_sp = kan_space_fused(x_in, in_x[index],
                                         self.kan_local_space[index],
                                         self.kan_global_space[index])
            local_out_space.append(l_sp.reshape(B, L, M))
            global_out_space.append(g_sp.reshape(B, L, M))

        local_out_time = list(_flatten(local_out_time))
        global_out_time = list(_flatten(global_out_time))
        local_out_space = list(_flatten(local_out_space))
        global_out_space = list(_flatten(global_out_space))

        if self.output_attention:
            return (local_out_time, global_out_time, local_out_space, global_out_space)
        return None


# ---------------------------------------------------------------------------
# Pure-JAX reference of the KAN surrogate (for a numerical sanity check)
# ---------------------------------------------------------------------------
def _kan_ref(x, params):
    w1, b1, w2, b2 = params
    h = x @ w1 + b1
    h = h * jax.nn.sigmoid(h)
    return h @ w2 + b2


if __name__ == "__main__":
    B, L, channel = 2, 8, 4
    local_size = [3]
    global_size = [5]
    d_model = 32

    model = GRUSTAD(batch_size=B, win_size=L, enc_in=channel, c_out=channel,
                    d_model=d_model, local_size=local_size,
                    global_size=global_size, channel=channel,
                    output_attention=True, key=jax.random.PRNGKey(42))

    key = jax.random.PRNGKey(0)
    kx, k1, k2, k3 = jax.random.split(key, 4)
    x_in = jax.random.normal(kx, (B, L, channel), jnp.float32)
    # KAN([local_size-1, d_model, 1]) input
    in_size = [jax.random.normal(k1, (B, L, channel, local_size[0] - 1), jnp.float32)]
    # KAN([global_size-local_size, d_model, 1]) input
    in_num = [jax.random.normal(
        k2, (B, L, channel, global_size[0] - local_size[0]), jnp.float32)]
    # KAN([channel, d_model, channel]) input (before permute(0,1,3,2))
    in_x = [jax.random.normal(k3, (B, L, channel, local_size[0]), jnp.float32)]

    outs = model.forward(x_in, in_size, in_num, op=None, it=None, in_x=in_x)
    jax.block_until_ready(outs)

    # sanity: shapes of all four output lists
    for group in outs:
        for t in group:
            assert t.shape == (B, L, channel), t.shape

    # numerical sanity vs. a pure-JAX reference of the same surrogate
    ref_lt = _kan_ref(in_size[0], model.kan_local_time[0]).reshape(B, L, channel)
    ref_gt = _kan_ref(in_num[0], model.kan_global_time[0]).reshape(B, L, channel)
    ref_ls = _kan_ref(x_in, model.kan_local_space[0]).reshape(B, L, channel)
    ref_gs = jnp.mean(
        jnp.transpose(
            _kan_ref(jnp.transpose(in_x[0], (0, 1, 3, 2)),
                     model.kan_global_space[0]),
            (0, 1, 3, 2)),
        axis=-1)
    np.testing.assert_allclose(np.asarray(outs[0][0]), np.asarray(ref_lt),
                               rtol=5e-2, atol=5e-2)
    np.testing.assert_allclose(np.asarray(outs[1][0]), np.asarray(ref_gt),
                               rtol=5e-2, atol=5e-2)
    np.testing.assert_allclose(np.asarray(outs[2][0]), np.asarray(ref_ls),
                               rtol=5e-2, atol=5e-2)
    np.testing.assert_allclose(np.asarray(outs[3][0]), np.asarray(ref_gs),
                               rtol=5e-2, atol=5e-2)

    print("KERNEL_OK")
</pallas_src>

<mosaic_0001>
module attributes {stable_mosaic.version = 11 : i64} {
  func.func @_kan_time_kernel(%arg0: i32, %arg1: memref<2x128xf32, #tpu.memory_space<vmem>>, %arg2: memref<32x2xf32, #tpu.memory_space<vmem>>, %arg3: memref<32x1xf32, #tpu.memory_space<vmem>>, %arg4: memref<32x1xf32, #tpu.memory_space<vmem>>, %arg5: memref<1x1xf32, #tpu.memory_space<vmem>>, %arg6: memref<1x128xf32, #tpu.memory_space<vmem>>) attributes {dimension_semantics = [#tpu.dimension_semantics<parallel>], iteration_bounds = array<i64: 1>, scalar_prefetch = 0 : i64, scratch_operands = 0 : i64, tpu.core_type = #tpu.core_type<tc>, window_params = [{transform_indices = @transform_0, window_bounds = array<i64: 2, 128>}, {pipeline_mode = #tpu.pipeline_mode<synchronous>, transform_indices = @transform_1, window_bounds = array<i64: 32, 2>}, {pipeline_mode = #tpu.pipeline_mode<synchronous>, transform_indices = @transform_2, window_bounds = array<i64: 32, 1>}, {pipeline_mode = #tpu.pipeline_mode<synchronous>, transform_indices = @transform_3, window_bounds = array<i64: 32, 1>}, {pipeline_mode = #tpu.pipeline_mode<synchronous>, transform_indices = @transform_4, window_bounds = array<i64: 1, 1>}, {transform_indices = @transform_5, window_bounds = array<i64: 1, 128>}]} {
    %c0 = arith.constant 0 : index
    %c0_0 = arith.constant 0 : index
    %0 = vector.load %arg1[%c0, %c0_0] : memref<2x128xf32, #tpu.memory_space<vmem>>, vector<2x128xf32>
    %c0_1 = arith.constant 0 : index
    %c0_2 = arith.constant 0 : index
    %1 = vector.load %arg2[%c0_1, %c0_2] : memref<32x2xf32, #tpu.memory_space<vmem>>, vector<32x2xf32>
    %2 = vector.extract_strided_slice %1 {offsets = [0, 0], sizes = [32, 1], strides = [1, 1]} : vector<32x2xf32> to vector<32x1xf32>
    %3 = vector.extract_strided_slice %0 {offsets = [0, 0], sizes = [1, 128], strides = [1, 1]} : vector<2x128xf32> to vector<1x128xf32>
    %4 = vector.broadcast %2 : vector<32x1xf32> to vector<32x128xf32>
    %5 = vector.broadcast %3 : vector<1x128xf32> to vector<32x128xf32>
    %6 = arith.mulf %4, %5 : vector<32x128xf32>
    %c0_3 = arith.constant 0 : index
    %c0_4 = arith.constant 0 : index
    %7 = vector.load %arg3[%c0_3, %c0_4] : memref<32x1xf32, #tpu.memory_space<vmem>>, vector<32x1xf32>
    %8 = vector.broadcast %7 : vector<32x1xf32> to vector<32x128xf32>
    %9 = arith.addf %6, %8 : vector<32x128xf32>
    %10 = vector.extract_strided_slice %1 {offsets = [0, 1], sizes = [32, 1], strides = [1, 1]} : vector<32x2xf32> to vector<32x1xf32>
    %11 = vector.extract_strided_slice %0 {offsets = [1, 0], sizes = [1, 128], strides = [1, 1]} : vector<2x128xf32> to vector<1x128xf32>
    %12 = vector.broadcast %10 : vector<32x1xf32> to vector<32x128xf32>
    %13 = vector.broadcast %11 : vector<1x128xf32> to vector<32x128xf32>
    %14 = arith.mulf %12, %13 : vector<32x128xf32>
    %15 = arith.addf %9, %14 : vector<32x128xf32>
    %cst = arith.constant 5.000000e-01 : f32
    %16 = vector.broadcast %cst : f32 to vector<32x128xf32>
    %17 = arith.mulf %16, %15 : vector<32x128xf32>
    %cst_5 = arith.constant 5.000000e-01 : f32
    %18 = vector.broadcast %cst_5 : f32 to vector<32x128xf32>
    %19 = arith.mulf %18, %15 : vector<32x128xf32>
    %20 = math.tanh %19 : vector<32x128xf32>
    %cst_6 = arith.constant 1.000000e+00 : f32
    %21 = vector.broadcast %cst_6 : f32 to vector<32x128xf32>
    %22 = arith.addf %20, %21 : vector<32x128xf32>
    %23 = arith.mulf %17, %22 : vector<32x128xf32>
    %c0_7 = arith.constant 0 : index
    %c0_8 = arith.constant 0 : index
    %24 = vector.load %arg4[%c0_7, %c0_8] : memref<32x1xf32, #tpu.memory_space<vmem>>, vector<32x1xf32>
    %25 = vector.broadcast %24 : vector<32x1xf32> to vector<32x128xf32>
    %26 = arith.mulf %23, %25 : vector<32x128xf32>
    %cst_9 = arith.constant dense<0.000000e+00> : vector<128xf32>
    %27 = vector.multi_reduction <add>, %26, %cst_9 [0] : vector<32x128xf32> to vector<128xf32>
    %28 = vector.shape_cast %27 : vector<128xf32> to vector<1x128xf32>
    %c0_10 = arith.constant 0 : index
    %c0_11 = arith.constant 0 : index
    %29 = vector.load %arg5[%c0_10, %c0_11] : memref<1x1xf32, #tpu.memory_space<vmem>>, vector<1x1xf32>
    %30 = vector.broadcast %29 : vector<1x1xf32> to vector<1x128xf32>
    %31 = arith.addf %28, %30 : vector<1x128xf32>
    %c0_12 = arith.constant 0 : index
    %c0_13 = arith.constant 0 : index
    %32 = vector.load %arg6[%c0_12, %c0_13] : memref<1x128xf32, #tpu.memory_space<vmem>>, vector<1x128xf32>
    tpu.vector_store %arg6[%c0_12, %c0_13], %31 {strides = array<i32>} : memref<1x128xf32, #tpu.memory_space<vmem>>, vector<1x128xf32>,
    return
  }
  func.func @transform_0(%arg0: i32) -> (i32, i32) {
    %c0_i32 = arith.constant 0 : i32
    %c0_i32_0 = arith.constant 0 : i32
    return %c0_i32, %arg0 : i32, i32
  }
  func.func @transform_1(%arg0: i32) -> (i32, i32) {
    %c0_i32 = arith.constant 0 : i32
    %c0_i32_0 = arith.constant 0 : i32
    %c0_i32_1 = arith.constant 0 : i32
    return %c0_i32, %c0_i32_0 : i32, i32
  }
  func.func @transform_2(%arg0: i32) -> (i32, i32) {
    %c0_i32 = arith.constant 0 : i32
    %c0_i32_0 = arith.constant 0 : i32
    %c0_i32_1 = arith.constant 0 : i32
    return %c0_i32, %c0_i32_0 : i32, i32
  }
  func.func @transform_3(%arg0: i32) -> (i32, i32) {
    %c0_i32 = arith.constant 0 : i32
    %c0_i32_0 = arith.constant 0 : i32
    %c0_i32_1 = arith.constant 0 : i32
    return %c0_i32, %c0_i32_0 : i32, i32
  }
  func.func @transform_4(%arg0: i32) -> (i32, i32) {
    %c0_i32 = arith.constant 0 : i32
    %c0_i32_0 = arith.constant 0 : i32
    %c0_i32_1 = arith.constant 0 : i32
    return %c0_i32, %c0_i32_0 : i32, i32
  }
  func.func @transform_5(%arg0: i32) -> (i32, i32) {
    %c0_i32 = arith.constant 0 : i32
    %c0_i32_0 = arith.constant 0 : i32
    return %c0_i32, %arg0 : i32, i32
  }
}

</mosaic_0001>

<bundles_post_ra>
// kernel: tpu_custom_call.1
= control target key start
LH: loop header
LB: loop body
LE: loop exit
PB: predicated region body
PF: predicated region fallthrough
CT: control target
= control target key end

     0   :  { %s327_s0 = inlined_call_operand.vmem [shape: f32[2,128], index: 0, kind: input, shape index: {}]   ;;  %s328_s1 = inlined_call_operand.vmem [shape: f32[32,2], index: 1, kind: input, shape index: {}]   ;;  %s329_s2 = inlined_call_operand.vmem [shape: f32[32,1], index: 2, kind: input, shape index: {}]   ;;  %s330_s3 = inlined_call_operand.vmem [shape: f32[32,1], index: 3, kind: input, shape index: {}]   ;;  %s331_s4 = inlined_call_operand.<no memory space> [shape: f32[1,1], index: 4, kind: input, shape index: {}]   ;;  %s332_s5 = inlined_call_operand.hbm [shape: f32[1,128], index: 5, kind: output, shape index: {}]  }
   0x1   :  { %v10_v0 = vstv %s331_s4 }
   0x2   :  { %11 = vst [vmem:[#allocation2] sm:$0x1] %v10_v0 }
   0x3   :  { %v26_v1 = vld [vmem:[%s328_s1 + $0x10] sm:$0xff]  ;;  %v24_v2 = vld [vmem:[%s328_s1] sm:$0xff]  ;;  %v232_v3 = vmov 0   ;;  %v25_v5 = vld [vmem:[%s328_s1 + $0x8] sm:$0xff] }
   0x4   :  { %195 = vset.pattern.permute.xlu1 %v232_v3  ;;  %194 = vset.pattern.permute.xlu0 %v232_v3  ;;  %v56_v4 = vld [vmem:[%s329_s2] sm:$0xff] }
   0x5   :  { %40 = vperm.xlu1 %195, %v26_v1   ;;  %30 = vperm.xlu0 %194, %v24_v2  }
   0x6   :  { %12 = vsyncpa [#allocation4], 0  ;;  %v57_v6 = vld [vmem:[%s329_s2 + $0x8] sm:$0xff]  ;;  %v233_v7 = vmov 1   ;;  %v27_v8 = vld [vmem:[%s328_s1 + $0x18] sm:$0xff]  ;;  %v48_v16 = vlaneseq }
   0x7   :  { %v58_v9 = vld [vmem:[%s329_s2 + $0x10] sm:$0xff]  ;;  %v59_v10 = vld [vmem:[%s329_s2 + $0x18] sm:$0xff]  ;;  %v128_v11 = vld [vmem:[%s330_s3] sm:$0xff] }
   0x8   :  { %v129_v12 = vld [vmem:[%s330_s3 + $0x8] sm:$0xff]  ;;  %v130_v13 = vld [vmem:[%s330_s3 + $0x10] sm:$0xff]  ;;  %v131_v15 = vld [vmem:[%s330_s3 + $0x18] sm:$0xff]  ;;  %v304_v17 = vshrl.u32 %v48_v16, 7 }
   0x9   :  { %62 = vperm.xlu1 %195, %v56_v4   ;;  %35 = vperm.xlu0 %194, %v25_v5   ;;  %v165_v14 = vld [vmem:[#allocation2] sm:$0x1] }
   0xa   :  { %v50_v18 = vsub.s32 0, %v304_v17  ;;  %v23_v19 = vld [vmem:[%s327_s0] sm:$0x3]  ;;  %v102_v23 = vsub.s32 1, %v304_v17  ;;  %s234_s0 = smov [#allocation3]  }
   0xb   :  { %s183_s3 = sshll.u32 %s234_s0, 4  ;;  %s184_s3 = int_to_ptr.vmem [resolvable:$true] %s183_s3 }
   0xc   :  { %v51_v22 = vrot.slane %v23_v19, %v50_v18  ;;  %v103_v27 = vrot.slane %v23_v19, %v102_v23  ;;  %s208_s18 = scalar_lea.vmem %s184_s3, 16  ;;  %s212_s19 = scalar_lea.vmem %s184_s3, 32 }
   0xd   :  { %196 = vset.pattern.permute.xlu1 %v233_v7  ;;  %67 = vperm.xlu0 %194, %v57_v6   ;;  %p209_p0 = scmp.ne.s32.totalorder %s184_s3, %s208_s18  ;;  %p213_p1 = scmp.lt.s32.totalorder %s184_s3, %s184_s3 }
   0xe   :  { %85 = vperm.xlu1 %196, %v24_v2   ;;  %p214_p2 = scmp.lt.s32.totalorder %s212_s19, %s208_s18 }
  0x10   :  { %p215_p3 = por %p214_p2, %p213_p1 }
  0x11   :  { %197 = vset.pattern.permute.xlu0 %v233_v7 }
  0x12   :  { %198 = vset.pattern.permute.xlu1 %v232_v3  ;;  %89 = vperm.xlu0 %197, %v25_v5   ;;  %p216_p4 = pnand %p215_p3, %p209_p0 }
  0x13   :  { %45 = vperm.xlu1 %198, %v27_v8  }
  0x16   :  { %93 = vperm.xlu0 %197, %v26_v1  }
  0x17   :  { %72 = vperm.xlu1 %198, %v58_v9  }
  0x1a   :  { %97 = vperm.xlu0 %197, %v27_v8  }
  0x1b   :  { %77 = vperm.xlu1 %198, %v59_v10  }
  0x1e   :  { %199 = vset.pattern.permute.xlu0 %v232_v3 }
  0x1f   :  { %134 = vperm.xlu1 %198, %v128_v11   ;;  %139 = vperm.xlu0 %199, %v129_v12  }
  0x23   :  { %144 = vperm.xlu1 %198, %v130_v13   ;;  %168 = vperm.xlu0 %199, %v165_v14  }
  0x27   :  { %149 = vperm.xlu1 %198, %v131_v15  }
  0x84   :  { %v41_v20 = vpop.permute.xlu1 %40  ;;  %v31_v21 = vpop.permute.xlu0 %30 }
  0x85   :  { %v52_v26 = vmul.f32 %v51_v22, %v31_v21  ;;  %v54_v40 = vmul.f32 %v51_v22, %v41_v20 }
  0x88   :  { %v63_v24 = vpop.permute.xlu1 %62  ;;  %v36_v25 = vpop.permute.xlu0 %35 }
  0x89   :  { %v80_v30 = vadd.f32 %v63_v24, %v52_v26  ;;  %v53_v32 = vmul.f32 %v51_v22, %v36_v25 }
  0x8c   :  { %v68_v28 = vpop.permute.xlu0 %67 }
  0x8d   :  { %v86_v29 = vpop.permute.xlu1 %85  ;;  %v81_v35 = vadd.f32 %v68_v28, %v53_v32 }
  0x8e   :  { %v104_v31 = vmul.f32 %v103_v27, %v86_v29 }
  0x90   :  { %v108_v33 = vadd.f32 %v104_v31, %v80_v30 }
  0x91   :  { %v90_v34 = vpop.permute.xlu0 %89 }
  0x92   :  { %v105_v36 = vmul.f32 %v103_v27, %v90_v34  ;;  %v46_v37 = vpop.permute.xlu1 %45  ;;  %v112_v38 = vmul.f32 0.5, %v108_v33 }
  0x93   :  { %v55_v46 = vmul.f32 %v51_v22, %v46_v37 }
  0x94   :  { %v109_v39 = vadd.f32 %v105_v36, %v81_v35  ;;  %200 = vtanh.f32 %v112_v38 }
  0x95   :  { %v94_v41 = vpop.permute.xlu0 %93 }
  0x96   :  { %v113_v42 = vmul.f32 0.5, %v109_v39  ;;  %v106_v43 = vmul.f32 %v103_v27, %v94_v41  ;;  %v73_v44 = vpop.permute.xlu1 %72 }
  0x97   :  { %v82_v45 = vadd.f32 %v73_v44, %v54_v40 }
  0x98   :  { %202 = vtanh.f32 %v113_v42 }
  0x99   :  { %v110_v47 = vadd.f32 %v106_v43, %v82_v45  ;;  %v98_v48 = vpop.permute.xlu0 %97 }
  0x9a   :  { %v107_v49 = vmul.f32 %v103_v27, %v98_v48  ;;  %v78_v50 = vpop.permute.xlu1 %77 }
  0x9b   :  { %v114_v51 = vmul.f32 0.5, %v110_v47  ;;  %v83_v52 = vadd.f32 %v78_v50, %v55_v46 }
  0x9d   :  { %204 = vtanh.f32 %v114_v51  ;;  %v111_v53 = vadd.f32 %v107_v49, %v83_v52 }
  0x9e   :  { %v201_v55 = vpop.eup %200  ;;  %v135_v57 = vpop.permute.xlu1 %134 }
  0x9f   :  { %v115_v54 = vmul.f32 0.5, %v111_v53  ;;  %v120_v59 = vadd.f32 1.0, %v201_v55  ;;  %v140_v62 = vpop.permute.xlu0 %139 }
  0xa1   :  { %206 = vtanh.f32 %v115_v54  ;;  %v124_v63 = vmul.f32 %v120_v59, %v112_v38 }
  0xa2   :  { %v203_v56 = vpop.eup %202  ;;  %v145_v1 = vpop.permute.xlu1 %144 }
  0xa3   :  { %v121_v58 = vadd.f32 1.0, %v203_v56  ;;  %v152_v5 = vmul.f32 %v135_v57, %v124_v63  ;;  %v169_v20 = vpop.permute.xlu0 %168 }
  0xa4   :  { %v174_v22 = vrot.slane %v169_v20, %v50_v18 }
  0xa5   :  { %v125_v60 = vmul.f32 %v121_v58, %v113_v42 }
  0xa6   :  { %v150_v10 = vpop.permute.xlu1 %149 }
  0xa7   :  { %v205_v61 = vpop.eup %204  ;;  %v153_v3 = vmul.f32 %v140_v62, %v125_v60 }
  0xa8   :  { %v122_v0 = vadd.f32 1.0, %v205_v61 }
  0xa9   :  { %v156_v9 = vadd.f32 %v153_v3, %v152_v5 }
  0xaa   :  { %v126_v2 = vmul.f32 %v122_v0, %v114_v51 }
  0xab   :  { %v207_v4 = vpop.eup %206 }
  0xac   :  { %v154_v6 = vmul.f32 %v145_v1, %v126_v2  ;;  %v123_v7 = vadd.f32 1.0, %v207_v4 }
  0xae   :  { %v127_v8 = vmul.f32 %v123_v7, %v115_v54  ;;  %v157_v12 = vadd.f32 %v156_v9, %v154_v6 }
  0xb0   :  { %v155_v11 = vmul.f32 %v150_v10, %v127_v8 }
  0xb2   :  { %v158_v13 = vadd.f32 %v157_v12, %v155_v11 }
  0xb4   :  { %v159_v14 = vrot.slane %v158_v13, 4 }
  0xb6   :  { %v160_v15 = vadd.f32 %v159_v14, %v158_v13 }
  0xb8   :  { %v161_v16 = vrot.slane %v160_v15, 2 }
  0xba   :  { %v162_v19 = vadd.f32 %v161_v16, %v160_v15 }
  0xbc   :  { %v163_v21 = vrot.slane %v162_v19, 1 }
  0xbe   :  { %v164_v23 = vadd.f32 %v163_v21, %v162_v19 }
  0xc0   :  { %v175_v24 = vadd.f32 %v174_v22, %v164_v23 }
  0xc2   :  { %176 = vst [vmem:[#allocation3] sm:$0x1] %v175_v24 }
  0xc3   :  { %219 = shalt.err (!%p216_p4)
}
  0xc4   :  { %s220_s22 = scalar_lea.hbm %s332_s5, 16 }
  0xc5   :  { %p221_p5 = scmp.ne.s32.totalorder %s332_s5, %s220_s22  ;;  %p224_p6 = scmp.lt.u32.totalorder %s220_s22, %s332_s5 }
  0xc7   :  { %p226_p7 = pnand %p224_p6, %p221_p5 }
  0xc9   :  { %229 = shalt.err (!%p226_p7)
}
  0xca   :  { %186 = dma.vmem_to_hbm [thread:$0]  %s184_s3, 16, %s332_s5, [#allocation4]  }
  0xcb   :  { %230 = dma.done.wait [#allocation4], 16  }
  0xcc   :  { %231 = vsyncadd [#allocation4], 4294967280 }
  0xcd   :  { %190 = vsyncpa [#allocation4], 1 }

</bundles_post_ra>
